<compile_context>
chip_gen: v5e
topology: v5e:2x2
jax: 0.10.0
libtpu: 0.0.40
codegen_flags: <defaults>
</compile_context>

<pallas_src>
import jax
import jax.numpy as jnp
from jax import lax
from jax.experimental import pallas as pl
from jax.experimental.pallas import tpu as pltpu


_NEG_BIG = -1e30  # bias for padded vocab columns: exp(-1e30 - m) == 0 in f32


def _round_up(x, m):
    return ((x + m - 1) // m) * m


def _fused_kernel(x_ref, w_ref, b_ref, o_ref):
    # x_ref: (tm, H) bf16 | w_ref: (Vp, H) bf16 | b_ref: (1, Vp) f32 | o_ref: (tm, Vp)
    logits = lax.dot_general(
        x_ref[...], w_ref[...],
        dimension_numbers=(((1,), (1,)), ((), ())),   # contract on H; no transpose in HBM
        preferred_element_type=jnp.float32,
    )
    logits = logits + b_ref[...]
    m = jnp.max(logits, axis=-1, keepdims=True)
    shifted = logits - m
    lse = jnp.log(jnp.sum(jnp.exp(shifted), axis=-1, keepdims=True))
    o_ref[...] = (shifted - lse).astype(o_ref.dtype)


def _tiled_kernel(x_ref, w_ref, b_ref, logits_ref, lse_ref, m_ref, l_ref):
    # grid = (row tiles [parallel], V tiles [arbitrary, innermost])
    # x_ref: (tm, H) bf16 resident across V axis | w_ref: (tv, H) bf16 streamed
    # b_ref: (1, tv) f32 | logits_ref: (tm, tv) raw logits out | lse_ref: (tm, 1)
    # m_ref/l_ref: (tm, 1) f32 running max / running sum-exp scratch
    j = pl.program_id(1)

    @pl.when(j == 0)
    def _init():
        m_ref[...] = jnp.full_like(m_ref, -jnp.inf)
        l_ref[...] = jnp.zeros_like(l_ref)

    logits = lax.dot_general(
        x_ref[...], w_ref[...],
        dimension_numbers=(((1,), (1,)), ((), ())),
        preferred_element_type=jnp.float32,
    )
    logits = logits + b_ref[...]

    # online logsumexp update (all f32)
    m_old = m_ref[...]
    m_new = jnp.maximum(m_old, jnp.max(logits, axis=-1, keepdims=True))
    l_ref[...] = l_ref[...] * jnp.exp(m_old - m_new) + jnp.sum(
        jnp.exp(logits - m_new), axis=-1, keepdims=True)
    m_ref[...] = m_new

    # raw logits streamed out lane-dense; normalized by a cheap XLA epilogue
    logits_ref[...] = logits.astype(logits_ref.dtype)

    @pl.when(j == pl.num_programs(1) - 1)
    def _finalize():
        lse_ref[...] = m_ref[...] + jnp.log(l_ref[...])


def projection_forward(x, weight, bias, *, tm=256, tv=512,
                       out_dtype=jnp.float32,
                       weight_vmem_budget_bytes=8 * 2**20,
                       force_tiled=False):
    """
    x:      (B, T, H)
    weight: (V, H)   (PyTorch nn.Linear layout; NOT pre-transposed)
    bias:   (V,)
    returns (B, T, V) == log_softmax(x @ weight.T + bias, axis=-1)
    """
    B, T, H = x.shape
    V = weight.shape[0]
    rows = B * T

    # ---- row tiling: pad rows to a multiple of the (clamped) row tile ----
    tm_eff = min(tm, _round_up(rows, 8))
    rows_pad = _round_up(rows, tm_eff)

    x2 = x.reshape(rows, H)
    if rows_pad != rows:
        x2 = jnp.pad(x2, ((0, rows_pad - rows), (0, 0)))
    # bf16 matmul operands, f32 accumulation.
    # TODO(synk): in training, persist the weight in bf16 outside the jit
    # boundary so this cast is not a per-call HBM pass.
    x2 = x2.astype(jnp.bfloat16)
    w = weight.astype(jnp.bfloat16)                    # stays (V, H)
    b = bias.astype(jnp.float32).reshape(1, V)

    out_bytes = jnp.dtype(out_dtype).itemsize
    resident_w_bytes = 2 * _round_up(V, 128) * H * 2   # double-buffered bf16 block
    use_tiled = force_tiled or resident_w_bytes > weight_vmem_budget_bytes

    if not use_tiled:
        # ---------------- fused path: full weight resident in VMEM ----------------
        Vp = _round_up(V, 128)
        if Vp != V:
            w = jnp.pad(w, ((0, Vp - V), (0, 0)))
            b = jnp.pad(b, ((0, 0), (0, Vp - V)), constant_values=_NEG_BIG)
        n_row = rows_pad // tm_eff

        est = (2 * tm_eff * H * 2 + 2 * Vp * H * 2 + 2 * Vp * 4
               + 2 * tm_eff * Vp * out_bytes)
        vmem_limit = int(min(64 * 2**20, max(32 * 2**20, 2 * est)))

        out2 = pl.pallas_call(
            _fused_kernel,
            out_shape=jax.ShapeDtypeStruct((rows_pad, Vp), out_dtype),
            grid_spec=pltpu.PrefetchScalarGridSpec(
                num_scalar_prefetch=0,
                grid=(n_row,),
                in_specs=[
                    pl.BlockSpec((tm_eff, H), lambda i: (i, 0)),   # row tile of x
                    pl.BlockSpec((Vp, H), lambda i: (0, 0)),       # resident weight
                    pl.BlockSpec((1, Vp), lambda i: (0, 0)),       # resident bias
                ],
                out_specs=pl.BlockSpec((tm_eff, Vp), lambda i: (i, 0)),
            ),
            compiler_params=pltpu.CompilerParams(
                dimension_semantics=("parallel",),
                vmem_limit_bytes=vmem_limit,
            ),
        )(x2, w, b)
        out2 = out2[:rows, :V]
    else:
        # -------- tiled path: stream weight over V, online logsumexp --------
        tv_eff = min(tv, _round_up(V, 128))
        Vp = _round_up(V, tv_eff)
        if Vp != V:
            w = jnp.pad(w, ((0, Vp - V), (0, 0)))
            b = jnp.pad(b, ((0, 0), (0, Vp - V)), constant_values=_NEG_BIG)
        n_row = rows_pad // tm_eff
        n_v = Vp // tv_eff

        est = (2 * tm_eff * H * 2 + 2 * tv_eff * H * 2 + 2 * tv_eff * 4
               + 2 * tm_eff * tv_eff * out_bytes + 4 * tm_eff * 4)
        vmem_limit = int(min(64 * 2**20, max(32 * 2**20, 2 * est)))

        logits_raw, lse = pl.pallas_call(
            _tiled_kernel,
            out_shape=(jax.ShapeDtypeStruct((rows_pad, Vp), out_dtype),
                       jax.ShapeDtypeStruct((rows_pad, 1), jnp.float32)),
            grid_spec=pltpu.PrefetchScalarGridSpec(
                num_scalar_prefetch=0,
                grid=(n_row, n_v),
                in_specs=[
                    pl.BlockSpec((tm_eff, H), lambda i, j: (i, 0)),   # x row tile
                    pl.BlockSpec((tv_eff, H), lambda i, j: (j, 0)),   # streamed weight tile
                    pl.BlockSpec((1, tv_eff), lambda i, j: (0, j)),   # bias tile
                ],
                out_specs=(
                    pl.BlockSpec((tm_eff, tv_eff), lambda i, j: (i, j)),  # raw logits
                    pl.BlockSpec((tm_eff, 1), lambda i, j: (i, 0)),       # per-row lse
                ),
                scratch_shapes=[pltpu.VMEM((tm_eff, 1), jnp.float32),
                                pltpu.VMEM((tm_eff, 1), jnp.float32)],
            ),
            compiler_params=pltpu.CompilerParams(
                dimension_semantics=("parallel", "arbitrary"),
                vmem_limit_bytes=vmem_limit,
            ),
        )(x2, w, b)
        # cheap epilogue (single fused XLA pass): normalize and unpad
        out2 = (logits_raw[:rows, :V].astype(jnp.float32)
                - lse[:rows]).astype(out_dtype)

    return out2.reshape(B, T, V)


if __name__ == "__main__":
    root_key = jax.random.PRNGKey(0)
    key_a, key_b = jax.random.split(root_key)

    def make_inputs(key, B, T, H, V):
        kx, kw, kb = jax.random.split(key, 3)
        bound = 1.0 / jnp.sqrt(H)
        x = jax.random.normal(kx, (B, T, H), dtype=jnp.float32)
        weight = jax.random.uniform(kw, (V, H), minval=-bound, maxval=bound,
                                    dtype=jnp.float32)
        bias = jax.random.uniform(kb, (V,), minval=-bound, maxval=bound,
                                  dtype=jnp.float32)
        return x, weight, bias

    def reference(x, weight, bias):
        # same bf16 operand quantization as the kernel; accumulate/softmax in f32
        xb = x.astype(jnp.bfloat16).astype(jnp.float32)
        wb = weight.astype(jnp.bfloat16).astype(jnp.float32)
        logits = jnp.einsum("bth,vh->btv", xb, wb) + bias
        return jax.nn.log_softmax(logits, axis=-1)

    # 1) Small module-consistent shape -> fused (weight-resident) path.
    B, T, H, V = 2, 8, 32, 128
    x, weight, bias = make_inputs(key_a, B, T, H, V)
    out = projection_forward(x, weight, bias)
    jax.block_until_ready(out)
    assert out.shape == (B, T, V) and out.dtype == jnp.float32
    assert jnp.allclose(out, reference(x, weight, bias), atol=1e-4, rtol=1e-4)

    # 2) Force the V-tiled streaming (online-logsumexp) path, exercising both
    #    row padding (rows=15) and vocab padding (V=320 -> 3 tiles of 128).
    B2, T2, H2, V2 = 3, 5, 32, 320
    x_t, weight_t, bias_t = make_inputs(key_b, B2, T2, H2, V2)
    out_t = projection_forward(x_t, weight_t, bias_t, tv=128, force_tiled=True)
    jax.block_until_ready(out_t)
    assert out_t.shape == (B2, T2, V2)
    assert jnp.allclose(out_t, reference(x_t, weight_t, bias_t),
                        atol=1e-4, rtol=1e-4)

    print("KERNEL_OK")
</pallas_src>

<mosaic_0001>
module attributes {stable_mosaic.version = 11 : i64} {
  func.func @_fused_kernel(%arg0: i32, %arg1: memref<16x32xbf16, #tpu.memory_space<vmem>>, %arg2: memref<128x32xbf16, #tpu.memory_space<vmem>>, %arg3: memref<1x128xf32, #tpu.memory_space<vmem>>, %arg4: memref<16x128xf32, #tpu.memory_space<vmem>>) attributes {dimension_semantics = [#tpu.dimension_semantics<parallel>], iteration_bounds = array<i64: 1>, scalar_prefetch = 0 : i64, scratch_operands = 0 : i64, tpu.core_type = #tpu.core_type<tc>, window_params = [{transform_indices = @transform_0, window_bounds = array<i64: 16, 32>}, {pipeline_mode = #tpu.pipeline_mode<synchronous>, transform_indices = @transform_1, window_bounds = array<i64: 128, 32>}, {pipeline_mode = #tpu.pipeline_mode<synchronous>, transform_indices = @transform_2, window_bounds = array<i64: 1, 128>}, {transform_indices = @transform_3, window_bounds = array<i64: 16, 128>}]} {
    %c0 = arith.constant 0 : index
    %c0_0 = arith.constant 0 : index
    %0 = vector.load %arg1[%c0, %c0_0] : memref<16x32xbf16, #tpu.memory_space<vmem>>, vector<16x32xbf16>
    %c0_1 = arith.constant 0 : index
    %c0_2 = arith.constant 0 : index
    %1 = vector.load %arg2[%c0_1, %c0_2] : memref<128x32xbf16, #tpu.memory_space<vmem>>, vector<128x32xbf16>
    %cst = arith.constant dense<0.000000e+00> : vector<16x128xf32>
    %2 = tpu.matmul %0, %1, %cst {dimension_numbers = #tpu.dot_dimension_numbers<[1], [1], [0], [0], [0, 0, 1, 0], [], []>} : vector<16x32xbf16>, vector<128x32xbf16>, vector<16x128xf32> -> vector<16x128xf32>
    %c0_3 = arith.constant 0 : index
    %c0_4 = arith.constant 0 : index
    %3 = vector.load %arg3[%c0_3, %c0_4] : memref<1x128xf32, #tpu.memory_space<vmem>>, vector<1x128xf32>
    %4 = vector.broadcast %3 : vector<1x128xf32> to vector<16x128xf32>
    %5 = arith.addf %2, %4 : vector<16x128xf32>
    %cst_5 = arith.constant dense<0xFF800000> : vector<16xf32>
    %6 = vector.multi_reduction <maximumf>, %5, %cst_5 [1] : vector<16x128xf32> to vector<16xf32>
    %7 = vector.shape_cast %6 : vector<16xf32> to vector<16x1xf32>
    %8 = vector.broadcast %7 : vector<16x1xf32> to vector<16x128xf32>
    %9 = arith.subf %5, %8 : vector<16x128xf32>
    %10 = math.exp %9 : vector<16x128xf32>
    %cst_6 = arith.constant dense<0.000000e+00> : vector<16xf32>
    %11 = vector.multi_reduction <add>, %10, %cst_6 [1] : vector<16x128xf32> to vector<16xf32>
    %12 = vector.shape_cast %11 : vector<16xf32> to vector<16x1xf32>
    %13 = math.log %12 : vector<16x1xf32>
    %14 = vector.broadcast %13 : vector<16x1xf32> to vector<16x128xf32>
    %15 = arith.subf %9, %14 : vector<16x128xf32>
    %c0_7 = arith.constant 0 : index
    %c0_8 = arith.constant 0 : index
    %16 = vector.load %arg4[%c0_7, %c0_8] : memref<16x128xf32, #tpu.memory_space<vmem>>, vector<16x128xf32>
    tpu.vector_store %arg4[%c0_7, %c0_8], %15 {strides = array<i32>} : memref<16x128xf32, #tpu.memory_space<vmem>>, vector<16x128xf32>,
    return
  }
  func.func @transform_0(%arg0: i32) -> (i32, i32) {
    %c0_i32 = arith.constant 0 : i32
    %c0_i32_0 = arith.constant 0 : i32
    return %arg0, %c0_i32 : i32, i32
  }
  func.func @transform_1(%arg0: i32) -> (i32, i32) {
    %c0_i32 = arith.constant 0 : i32
    %c0_i32_0 = arith.constant 0 : i32
    %c0_i32_1 = arith.constant 0 : i32
    return %c0_i32, %c0_i32_0 : i32, i32
  }
  func.func @transform_2(%arg0: i32) -> (i32, i32) {
    %c0_i32 = arith.constant 0 : i32
    %c0_i32_0 = arith.constant 0 : i32
    %c0_i32_1 = arith.constant 0 : i32
    return %c0_i32, %c0_i32_0 : i32, i32
  }
  func.func @transform_3(%arg0: i32) -> (i32, i32) {
    %c0_i32 = arith.constant 0 : i32
    %c0_i32_0 = arith.constant 0 : i32
    return %arg0, %c0_i32 : i32, i32
  }
}

</mosaic_0001>

<bundles_post_ra>
// kernel: tpu_custom_call.1
= control target key start
LH: loop header
LB: loop body
LE: loop exit
PB: predicated region body
PF: predicated region fallthrough
CT: control target
= control target key end

     0   :  { %vm82_vm0 = vcmask 261120   ;;  %s313_s0 = inlined_call_operand.vmem [shape: bf16[16,32], index: 0, kind: input, shape index: {}]   ;;  %s314_s1 = inlined_call_operand.vmem [shape: bf16[128,32], index: 1, kind: input, shape index: {}]   ;;  %s315_s2 = inlined_call_operand.vmem [shape: f32[1,128], index: 2, kind: input, shape index: {}]   ;;  %s316_s3 = inlined_call_operand.hbm [shape: f32[16,128], index: 3, kind: output, shape index: {}]  }
   0x1   :  { %v209_v0 = vld [vmem:[%s314_s1 + $0x38] sm:$0xff] }
   0x2   :  { %v108_v1 = vsel %vm82_vm0, %v209_v0, 0 }
   0x3   :  { %8 = vsyncpa [#allocation3], 0  ;;  %110 = vmatpush.bf16.xpose.msra.mxu0 %v108_v1  ;;  %v208_v2 = vld [vmem:[%s314_s1 + $0x30] sm:$0xff]  ;;  %v207_v4 = vld [vmem:[%s314_s1 + $0x28] sm:$0xff]  ;;  %s152_s6 = sshll.u32 %s316_s3, 4  ;;  %s249_s7 = smov 128   ;;  %s153_s6 = int_to_ptr.hbm [resolvable:$true] %s152_s6 }
   0x4   :  { %v105_v3 = vsel %vm82_vm0, %v208_v2, 0  ;;  %v102_v5 = vsel %vm82_vm0, %v207_v4, 0  ;;  %v206_v6 = vld [vmem:[%s314_s1 + $0x20] sm:$0xff]  ;;  %v205_v8 = vld [vmem:[%s314_s1 + $0x18] sm:$0xff]  ;;  %v204_v10 = vld [vmem:[%s314_s1 + $0x10] sm:$0xff]  ;;  %s250_s8 = smov 8  }
   0x5   :  { %v99_v7 = vsel %vm82_vm0, %v206_v6, 0  ;;  %v96_v9 = vsel %vm82_vm0, %v205_v8, 0  ;;  %v93_v11 = vsel %vm82_vm0, %v204_v10, 0  ;;  %v203_v12 = vld [vmem:[%s314_s1 + $0x8] sm:$0xff]  ;;  %v202_v14 = vld [vmem:[%s314_s1] sm:$0xff] }
   0x6   :  { %v90_v13 = vsel %vm82_vm0, %v203_v12, 0  ;;  %v87_v15 = vsel %vm82_vm0, %v202_v14, 0  ;;  %v201_v16 = vld [vmem:[%s313_s0] sm:$0xff]  ;;  %s248_s0 = smov [#allocation2]  }
   0x7   :  { %v213_v17 = vld [vmem:[%s315_s2] ss:$0 sm:$0xff]  ;;  %s150_s1 = sshll.u32 %s248_s0, 4  ;;  %s151_s1 = int_to_ptr.vmem [resolvable:$true] %s150_s1 }
   0xb   :  { %111 = vmatpush.bf16.xpose.msra.mxu0 %v105_v3 }
  0x13   :  { %112 = vmatpush.bf16.xpose.msra.mxu0 %v102_v5 }
  0x1b   :  { %113 = vmatpush.bf16.xpose.msra.mxu0 %v99_v7 }
  0x23   :  { %114 = vmatpush.bf16.xpose.msra.mxu0 %v96_v9 }
  0x2b   :  { %115 = vmatpush.bf16.xpose.msra.mxu0 %v93_v11 }
  0x33   :  { %116 = vmatpush.bf16.xpose.msra.mxu0 %v90_v13 }
  0x3b   :  { %117 = vmatpush.bf16.xpose.msra.mxu0 %v87_v15 }
  0x42   :  { %200 = vmatmul.msk.bf16.vlgmr.msra.gmra.mxu0 %vm82_vm0, %v201_v16 }
  0xbf   :  { %v119_v18 = vpop.f32.mrf.mxu0 }
  0xc0   :  { %v120_v19 = vadd.f32 %v213_v17, %v119_v18 }
  0xc2   :  { %124 = vmax.xlane.f32.xlu0 %v120_v19 }
  0xc7   :  { %v121_v20 = vpop.f32.mrf.mxu0 }
  0xc8   :  { %v122_v21 = vadd.f32 %v213_v17, %v121_v20 }
  0xca   :  { %126 = vmax.xlane.f32.xlu0 %v122_v21 }
 0x135   :  { %v125_v22 = vpop.xlane.xlu0 %124 }
 0x136   :  { %v128_v23 = vsub.f32 %v120_v19, %v125_v22 }
 0x138   :  { %v130_v24 = vmul.f32 1.442695, %v128_v23 }
 0x13a   :  { %214 = vpow2.f32 %v130_v24 }
 0x13d   :  { %v127_v25 = vpop.xlane.xlu0 %126 }
 0x13e   :  { %v129_v26 = vsub.f32 %v122_v21, %v127_v25 }
 0x140   :  { %v215_v27 = vpop.eup %214  ;;  %v132_v28 = vmul.f32 1.442695, %v129_v26 }
 0x141   :  { %134 = vadd.xlane.f32.xlu1 %v215_v27 }
 0x142   :  { %216 = vpow2.f32 %v132_v28 }
 0x148   :  { %v217_v29 = vpop.eup %216 }
 0x149   :  { %136 = vadd.xlane.f32.xlu1 %v217_v29 }
 0x1b4   :  { %v135_v30 = vpop.xlane.xlu1 %134 }
 0x1b5   :  { %218 = vlog2.f32 %v135_v30 }
 0x1bb   :  { %v219_v31 = vpop.eup %218 }
 0x1bc   :  { %v139_v32 = vmul.f32 0.6931472, %v219_v31  ;;  %v137_v33 = vpop.xlane.xlu1 %136 }
 0x1bd   :  { %220 = vlog2.f32 %v137_v33 }
 0x1be   :  { %v142_v34 = vsub.f32 %v128_v23, %v139_v32 }
 0x1c0   :  { %144 = vst [vmem:[#allocation2] sm:$0xff] %v142_v34 }
 0x1c3   :  { %v221_v35 = vpop.eup %220 }
 0x1c4   :  { %v141_v36 = vmul.f32 0.6931472, %v221_v35 }
 0x1c6   :  { %v143_v37 = vsub.f32 %v129_v26, %v141_v36 }
 0x1c8   :  { %145 = vst [vmem:[#allocation2 + $0x8] sm:$0xff] %v143_v37 }
 0x1c9   :  { %158 = dma.vmem_to_hbm [thread:$0]  %s151_s1, 256, %s153_s6, [#allocation3], %s249_s7, %s249_s7, %s250_s8  }
 0x1ca   :  { %246 = dma.done.wait [#allocation3], 256  }
 0x1cb   :  { %247 = vsyncadd [#allocation3], 4294967040 }
 0x1cc   :  { %163 = vsyncpa [#allocation3], 1 }

</bundles_post_ra>
